<compile_context>
chip_gen: v6e
topology: v6e:2x2x1
jax: 0.10.0
libtpu: 0.0.40
codegen_flags: <defaults>
</compile_context>

<pallas_src>
import functools

import jax
import jax.numpy as jnp
from jax.experimental import pallas as pl
from jax.experimental.pallas import tpu as pltpu

_EPS = 1e-5
# f32 elements per coset block (~4 MiB); 2 in + 2 out, double buffered -> ~32 MiB
_BLOCK_ELEM_BUDGET = 1 << 20


# ----------------------------------------------------------------------------
# helpers
# ----------------------------------------------------------------------------
def group_size_for(channels):
    # exact semantics of the PyTorch module
    return [gs for gs in [8, 4, 2, 1] if channels % gs == 0][0]


def _pick_channel_tile(channels, unit, per_channel_elems,
                       budget_elems=_BLOCK_ELEM_BUDGET):
    """Largest channel tile that divides `channels`, is a multiple of `unit`
    (the group size), is sublane friendly (multiple of 8 or the full channel
    extent) and fits the per-block element budget.  Falls back to the smallest
    legal tile if nothing fits."""
    cands = [c for c in range(unit, channels + 1, unit)
             if channels % c == 0 and (c % 8 == 0 or c == channels)]
    if not cands:
        cands = [channels]
    fitting = [c for c in cands if c * per_channel_elems <= budget_elems]
    return max(fitting) if fitting else min(cands)


def _vmem_limit_bytes(block_elems):
    # 2 inputs + 2 outputs, double-buffered, f32, plus slack for params.
    need = 8 * block_elems * 4 + (2 << 20)
    return int(min(max(need, 16 << 20), 64 << 20))


# ----------------------------------------------------------------------------
# Pallas kernels
# ----------------------------------------------------------------------------
def _group_norm_kernel(eps, cg, x0_ref, x1_ref, g_ref, b_ref, o0_ref, o1_ref):
    """One sample, `gb = cb // cg` whole groups per grid step.

    x blocks:     (1, cb, HW)   lane-dense spatial
    gamma/beta:   (1, cb, 1)
    Stats are per group over (cg channels, both cosets, HW).
    """
    v0 = x0_ref[...].astype(jnp.float32)
    v1 = x1_ref[...].astype(jnp.float32)
    _, cb, hw = v0.shape
    gb = cb // cg
    inv_cnt = 1.0 / float(2 * cg * hw)

    def group_reduce(a0, a1):
        # per-channel lane sums, then combine the cg channels of each group
        s = (jnp.sum(a0, axis=2, keepdims=True) +
             jnp.sum(a1, axis=2, keepdims=True))                   # (1, cb, 1)
        if gb == 1:
            return jnp.sum(s)                                       # one group
        sg = jnp.sum(s.reshape(gb, cg, 1), axis=1, keepdims=True)   # (gb, 1, 1)
        return jnp.broadcast_to(sg, (gb, cg, 1)).reshape(1, cb, 1)

    mean = group_reduce(v0, v1) * inv_cnt
    d0 = v0 - mean
    d1 = v1 - mean
    # two-pass variance (numerically stable vs E[x^2]-E[x]^2)
    var = group_reduce(d0 * d0, d1 * d1) * inv_cnt
    inv_std = jax.lax.rsqrt(var + eps)
    scale = inv_std * g_ref[...]
    shift = b_ref[...]
    o0_ref[...] = (d0 * scale + shift).astype(o0_ref.dtype)
    o1_ref[...] = (d1 * scale + shift).astype(o1_ref.dtype)


def _group_norm_kernel_4d(eps, x0_ref, x1_ref, g_ref, b_ref, o0_ref, o1_ref):
    """Fallback for odd channel counts: one (group, sample) per grid point.

    x blocks:     (1, cg, H, W)
    gamma/beta:   (1, cg, 1, 1)
    """
    v0 = x0_ref[...].astype(jnp.float32)
    v1 = x1_ref[...].astype(jnp.float32)
    inv_cnt = 1.0 / float(2 * v0.size)
    mean = (jnp.sum(v0) + jnp.sum(v1)) * inv_cnt
    d0 = v0 - mean
    d1 = v1 - mean
    var = (jnp.sum(d0 * d0) + jnp.sum(d1 * d1)) * inv_cnt
    inv_std = jax.lax.rsqrt(var + eps)
    scale = inv_std * g_ref[...]
    shift = b_ref[...]
    o0_ref[...] = (d0 * scale + shift).astype(o0_ref.dtype)
    o1_ref[...] = (d1 * scale + shift).astype(o1_ref.dtype)


def _channel_norm_kernel(eps, has_affine, *refs):
    """Per-channel statistics over (batch-in-block, both cosets, HW).

    x blocks:     (Nb, cb, HW)   ('in': Nb=1, 'bn': Nb=N)
    gamma/beta:   (1, cb, 1)     (only when has_affine)
    """
    if has_affine:
        x0_ref, x1_ref, g_ref, b_ref, o0_ref, o1_ref = refs
    else:
        x0_ref, x1_ref, o0_ref, o1_ref = refs

    v0 = x0_ref[...].astype(jnp.float32)
    v1 = x1_ref[...].astype(jnp.float32)
    nb, _, hw = v0.shape
    inv_cnt = 1.0 / float(2 * nb * hw)

    mean = (jnp.sum(v0, axis=(0, 2), keepdims=True) +
            jnp.sum(v1, axis=(0, 2), keepdims=True)) * inv_cnt      # (1, cb, 1)
    d0 = v0 - mean
    d1 = v1 - mean
    var = (jnp.sum(d0 * d0, axis=(0, 2), keepdims=True) +
           jnp.sum(d1 * d1, axis=(0, 2), keepdims=True)) * inv_cnt
    inv_std = jax.lax.rsqrt(var + eps)                               # (1, cb, 1)

    if has_affine:
        scale = inv_std * g_ref[...]
        shift = b_ref[...]
        o0_ref[...] = (d0 * scale + shift).astype(o0_ref.dtype)
        o1_ref[...] = (d1 * scale + shift).astype(o1_ref.dtype)
    else:
        o0_ref[...] = (d0 * inv_std).astype(o0_ref.dtype)
        o1_ref[...] = (d1 * inv_std).astype(o1_ref.dtype)


# ----------------------------------------------------------------------------
# Wrapper: LatticeNormalizationWrapper.forward
# ----------------------------------------------------------------------------
def lattice_normalization_forward(x0, x1, channels, normalization,
                                  gamma=None, beta=None):
    """Forward pass on a 'qc' lattice tensor given as its two cosets."""
    assert normalization in [None, 'bn', 'gn', 'in']
    if normalization is None:
        return x0, x1

    N, C, H, W = x0.shape
    assert x1.shape == (N, C, H, W) and C == channels
    HW = H * W
    # Layout-preserving reshape: present a lane-dense (last dim = H*W) slab.
    x0f = x0.reshape(N, C, HW)
    x1f = x1.reshape(N, C, HW)
    out_shapes = (jax.ShapeDtypeStruct((N, C, HW), x0.dtype),
                  jax.ShapeDtypeStruct((N, C, HW), x1.dtype))

    if normalization == 'gn':
        cg = group_size_for(C)                 # channels per group

        if cg % 8 != 0 and cg != C:
            # Odd channel count (>1 group, group size not sublane aligned):
            # per-(group, sample) 4D blocks avoid sublane tiling constraints.
            G = C // cg
            gam = gamma.astype(jnp.float32).reshape(G, cg, 1, 1)
            bet = beta.astype(jnp.float32).reshape(G, cg, 1, 1)
            x_spec = pl.BlockSpec((1, cg, H, W), lambda g, n: (n, g, 0, 0))
            p_spec = pl.BlockSpec((1, cg, 1, 1), lambda g, n: (g, 0, 0, 0))
            return pl.pallas_call(
                functools.partial(_group_norm_kernel_4d, _EPS),
                out_shape=(jax.ShapeDtypeStruct(x0.shape, x0.dtype),
                           jax.ShapeDtypeStruct(x1.shape, x1.dtype)),
                grid=(G, N),
                in_specs=[x_spec, x_spec, p_spec, p_spec],
                out_specs=(x_spec, x_spec),
                compiler_params=pltpu.CompilerParams(
                    dimension_semantics=("parallel", "parallel"),
                    vmem_limit_bytes=_vmem_limit_bytes(cg * HW)),
            )(x0, x1, gam, bet)

        # Common case: batch as many whole groups as fit into one block.
        cb = _pick_channel_tile(C, cg, HW)
        CT = C // cb
        gam = gamma.astype(jnp.float32).reshape(1, C, 1)
        bet = beta.astype(jnp.float32).reshape(1, C, 1)
        x_spec = pl.BlockSpec((1, cb, HW), lambda ci, n: (n, ci, 0))
        p_spec = pl.BlockSpec((1, cb, 1), lambda ci, n: (0, ci, 0))
        y0, y1 = pl.pallas_call(
            functools.partial(_group_norm_kernel, _EPS, cg),
            out_shape=out_shapes,
            # N is the inner grid axis so the gamma/beta block index is
            # constant across it (fetched once per channel tile).
            grid=(CT, N),
            in_specs=[x_spec, x_spec, p_spec, p_spec],
            out_specs=(x_spec, x_spec),
            compiler_params=pltpu.CompilerParams(
                dimension_semantics=("parallel", "parallel"),
                vmem_limit_bytes=_vmem_limit_bytes(cb * HW)),
        )(x0f, x1f, gam, bet)

    elif normalization == 'in':
        # nn.InstanceNorm default: affine=False -> no gamma/beta inputs.
        cb = _pick_channel_tile(C, 1, HW)
        CT = C // cb
        x_spec = pl.BlockSpec((1, cb, HW), lambda n, ci: (n, ci, 0))
        y0, y1 = pl.pallas_call(
            functools.partial(_channel_norm_kernel, _EPS, False),
            out_shape=out_shapes,
            grid=(N, CT),
            in_specs=[x_spec, x_spec],
            out_specs=(x_spec, x_spec),
            compiler_params=pltpu.CompilerParams(
                dimension_semantics=("parallel", "parallel"),
                vmem_limit_bytes=_vmem_limit_bytes(cb * HW)),
        )(x0f, x1f)

    else:
        # 'bn' -- training-mode batch statistics per channel, no transposes:
        # grid over channel tiles, block walks the original layout.
        cb = _pick_channel_tile(C, 1, N * HW)
        CT = C // cb
        gam = gamma.astype(jnp.float32).reshape(1, C, 1)
        bet = beta.astype(jnp.float32).reshape(1, C, 1)
        x_spec = pl.BlockSpec((N, cb, HW), lambda ci: (0, ci, 0))
        p_spec = pl.BlockSpec((1, cb, 1), lambda ci: (0, ci, 0))
        y0, y1 = pl.pallas_call(
            functools.partial(_channel_norm_kernel, _EPS, True),
            out_shape=out_shapes,
            grid=(CT,),
            in_specs=[x_spec, x_spec, p_spec, p_spec],
            out_specs=(x_spec, x_spec),
            compiler_params=pltpu.CompilerParams(
                dimension_semantics=("parallel",),
                vmem_limit_bytes=_vmem_limit_bytes(N * cb * HW)),
        )(x0f, x1f, gam, bet)

    return y0.reshape(N, C, H, W), y1.reshape(N, C, H, W)


# ----------------------------------------------------------------------------
# Pure-JAX references
# ----------------------------------------------------------------------------
def _ref_gn(x0, x1, gamma, beta, groups, eps=_EPS):
    N, C, H, W = x0.shape
    x = jnp.stack([x0, x1], axis=2)
    xr = x.reshape(N, groups, -1)
    m = xr.mean(-1, keepdims=True)
    v = xr.var(-1, keepdims=True)
    y = ((xr - m) / jnp.sqrt(v + eps)).reshape(N, C, 2, H, W)
    y = y * gamma[None, :, None, None, None] + beta[None, :, None, None, None]
    return y[:, :, 0], y[:, :, 1]


def _ref_in(x0, x1, eps=_EPS):
    N, C, H, W = x0.shape
    x = jnp.stack([x0, x1], axis=2).reshape(N, C, -1)
    m = x.mean(-1, keepdims=True)
    v = x.var(-1, keepdims=True)
    y = ((x - m) / jnp.sqrt(v + eps)).reshape(N, C, 2, H, W)
    return y[:, :, 0], y[:, :, 1]


def _ref_bn(x0, x1, gamma, beta, eps=_EPS):
    x = jnp.stack([x0, x1], axis=2)                      # (N, C, 2, H, W)
    m = x.mean(axis=(0, 2, 3, 4), keepdims=True)
    v = x.var(axis=(0, 2, 3, 4), keepdims=True)
    y = (x - m) / jnp.sqrt(v + eps)
    y = y * gamma[None, :, None, None, None] + beta[None, :, None, None, None]
    return y[:, :, 0], y[:, :, 1]


# ----------------------------------------------------------------------------
if __name__ == "__main__":
    def run_checks(N, C, H, W, key):
        k0, k1, kg, kb = jax.random.split(key, 4)
        x0 = jax.random.normal(k0, (N, C, H, W), jnp.float32)
        x1 = jax.random.normal(k1, (N, C, H, W), jnp.float32)
        gamma = 1.0 + 0.1 * jax.random.normal(kg, (C,), jnp.float32)
        beta = 0.1 * jax.random.normal(kb, (C,), jnp.float32)
        ok = True

        # --- 'gn' -------------------------------------------------------
        gs = group_size_for(C)
        g0, g1 = lattice_normalization_forward(x0, x1, C, 'gn', gamma, beta)
        jax.block_until_ready((g0, g1))
        r0, r1 = _ref_gn(x0, x1, gamma, beta, C // gs)
        ok &= bool(jnp.allclose(g0, r0, atol=1e-4, rtol=1e-4))
        ok &= bool(jnp.allclose(g1, r1, atol=1e-4, rtol=1e-4))

        # --- 'in' -------------------------------------------------------
        i0, i1 = lattice_normalization_forward(x0, x1, C, 'in')
        jax.block_until_ready((i0, i1))
        r0, r1 = _ref_in(x0, x1)
        ok &= bool(jnp.allclose(i0, r0, atol=1e-4, rtol=1e-4))
        ok &= bool(jnp.allclose(i1, r1, atol=1e-4, rtol=1e-4))

        # --- 'bn' -------------------------------------------------------
        b0, b1 = lattice_normalization_forward(x0, x1, C, 'bn', gamma, beta)
        jax.block_until_ready((b0, b1))
        r0, r1 = _ref_bn(x0, x1, gamma, beta)
        ok &= bool(jnp.allclose(b0, r0, atol=1e-4, rtol=1e-4))
        ok &= bool(jnp.allclose(b1, r1, atol=1e-4, rtol=1e-4))

        # --- None (identity) ---------------------------------------------
        n0, n1 = lattice_normalization_forward(x0, x1, C, None)
        jax.block_until_ready((n0, n1))
        ok &= bool(jnp.allclose(n0, x0)) and bool(jnp.allclose(n1, x1))
        return ok

    key = jax.random.PRNGKey(0)
    ka, kb = jax.random.split(key)
    ok = run_checks(2, 4, 16, 16, ka)     # single-group 'gn', full-C channel tiles
    ok &= run_checks(2, 16, 8, 8, kb)     # multi-group (cg=8) lane-dense path

    if not ok:
        raise SystemExit("mismatch vs pure-JAX reference")
    print("KERNEL_OK")
</pallas_src>

<mosaic_0001>
module attributes {stable_mosaic.version = 11 : i64} {
  func.func @_group_norm_kernel(%arg0: i32, %arg1: i32, %arg2: memref<1x4x256xf32, #tpu.memory_space<vmem>>, %arg3: memref<1x4x256xf32, #tpu.memory_space<vmem>>, %arg4: memref<1x4x1xf32, #tpu.memory_space<vmem>>, %arg5: memref<1x4x1xf32, #tpu.memory_space<vmem>>, %arg6: memref<1x4x256xf32, #tpu.memory_space<vmem>>, %arg7: memref<1x4x256xf32, #tpu.memory_space<vmem>>) attributes {dimension_semantics = [#tpu.dimension_semantics<parallel>, #tpu.dimension_semantics<parallel>], iteration_bounds = array<i64: 1, 2>, scalar_prefetch = 0 : i64, scratch_operands = 0 : i64, tpu.core_type = #tpu.core_type<tc>, window_params = [{transform_indices = @transform_0, window_bounds = array<i64: 1, 4, 256>}, {transform_indices = @transform_1, window_bounds = array<i64: 1, 4, 256>}, {transform_indices = @transform_2, window_bounds = array<i64: 1, 4, 1>}, {transform_indices = @transform_3, window_bounds = array<i64: 1, 4, 1>}, {transform_indices = @transform_4, window_bounds = array<i64: 1, 4, 256>}, {transform_indices = @transform_5, window_bounds = array<i64: 1, 4, 256>}]} {
    %c0 = arith.constant 0 : index
    %c0_0 = arith.constant 0 : index
    %c0_1 = arith.constant 0 : index
    %0 = vector.load %arg2[%c0, %c0_0, %c0_1] : memref<1x4x256xf32, #tpu.memory_space<vmem>>, vector<1x4x256xf32>
    %c0_2 = arith.constant 0 : index
    %c0_3 = arith.constant 0 : index
    %c0_4 = arith.constant 0 : index
    %1 = vector.load %arg3[%c0_2, %c0_3, %c0_4] : memref<1x4x256xf32, #tpu.memory_space<vmem>>, vector<1x4x256xf32>
    %cst = arith.constant dense<0.000000e+00> : vector<1x4xf32>
    %2 = vector.multi_reduction <add>, %0, %cst [2] : vector<1x4x256xf32> to vector<1x4xf32>
    %3 = vector.shape_cast %2 : vector<1x4xf32> to vector<1x4x1xf32>
    %cst_5 = arith.constant dense<0.000000e+00> : vector<1x4xf32>
    %4 = vector.multi_reduction <add>, %1, %cst_5 [2] : vector<1x4x256xf32> to vector<1x4xf32>
    %5 = vector.shape_cast %4 : vector<1x4xf32> to vector<1x4x1xf32>
    %6 = arith.addf %3, %5 : vector<1x4x1xf32>
    %7 = vector.shape_cast %6 : vector<1x4x1xf32> to vector<1x1x4x1xf32>
    %cst_6 = arith.constant dense<0.000000e+00> : vector<1xf32>
    %8 = vector.multi_reduction <add>, %7, %cst_6 [1, 2, 3] : vector<1x1x4x1xf32> to vector<1xf32>
    %9 = vector.shape_cast %8 : vector<1xf32> to vector<1x1x1x1xf32>
    %10 = vector.extract %9[0, 0, 0, 0] : f32 from vector<1x1x1x1xf32>
    %cst_7 = arith.constant 4.8828125E-4 : f32
    %11 = arith.mulf %10, %cst_7 : f32
    %12 = vector.broadcast %11 : f32 to vector<1x4x256xf32>
    %13 = arith.subf %0, %12 : vector<1x4x256xf32>
    %14 = vector.broadcast %11 : f32 to vector<1x4x256xf32>
    %15 = arith.subf %1, %14 : vector<1x4x256xf32>
    %16 = arith.mulf %13, %13 : vector<1x4x256xf32>
    %17 = arith.mulf %15, %15 : vector<1x4x256xf32>
    %cst_8 = arith.constant dense<0.000000e+00> : vector<1x4xf32>
    %18 = vector.multi_reduction <add>, %16, %cst_8 [2] : vector<1x4x256xf32> to vector<1x4xf32>
    %19 = vector.shape_cast %18 : vector<1x4xf32> to vector<1x4x1xf32>
    %cst_9 = arith.constant dense<0.000000e+00> : vector<1x4xf32>
    %20 = vector.multi_reduction <add>, %17, %cst_9 [2] : vector<1x4x256xf32> to vector<1x4xf32>
    %21 = vector.shape_cast %20 : vector<1x4xf32> to vector<1x4x1xf32>
    %22 = arith.addf %19, %21 : vector<1x4x1xf32>
    %23 = vector.shape_cast %22 : vector<1x4x1xf32> to vector<1x1x4x1xf32>
    %cst_10 = arith.constant dense<0.000000e+00> : vector<1xf32>
    %24 = vector.multi_reduction <add>, %23, %cst_10 [1, 2, 3] : vector<1x1x4x1xf32> to vector<1xf32>
    %25 = vector.shape_cast %24 : vector<1xf32> to vector<1x1x1x1xf32>
    %26 = vector.extract %25[0, 0, 0, 0] : f32 from vector<1x1x1x1xf32>
    %cst_11 = arith.constant 4.8828125E-4 : f32
    %27 = arith.mulf %26, %cst_11 : f32
    %cst_12 = arith.constant 9.99999974E-6 : f32
    %28 = arith.addf %27, %cst_12 : f32
    %29 = math.rsqrt %28 : f32
    %c0_13 = arith.constant 0 : index
    %c0_14 = arith.constant 0 : index
    %c0_15 = arith.constant 0 : index
    %30 = vector.load %arg4[%c0_13, %c0_14, %c0_15] : memref<1x4x1xf32, #tpu.memory_space<vmem>>, vector<1x4x1xf32>
    %31 = vector.broadcast %29 : f32 to vector<1x4x1xf32>
    %32 = arith.mulf %31, %30 : vector<1x4x1xf32>
    %c0_16 = arith.constant 0 : index
    %c0_17 = arith.constant 0 : index
    %c0_18 = arith.constant 0 : index
    %33 = vector.load %arg5[%c0_16, %c0_17, %c0_18] : memref<1x4x1xf32, #tpu.memory_space<vmem>>, vector<1x4x1xf32>
    %34 = vector.broadcast %32 : vector<1x4x1xf32> to vector<1x4x256xf32>
    %35 = arith.mulf %13, %34 : vector<1x4x256xf32>
    %36 = vector.broadcast %33 : vector<1x4x1xf32> to vector<1x4x256xf32>
    %37 = arith.addf %35, %36 : vector<1x4x256xf32>
    %c0_19 = arith.constant 0 : index
    %c0_20 = arith.constant 0 : index
    %c0_21 = arith.constant 0 : index
    %38 = vector.load %arg6[%c0_19, %c0_20, %c0_21] : memref<1x4x256xf32, #tpu.memory_space<vmem>>, vector<1x4x256xf32>
    tpu.vector_store %arg6[%c0_19, %c0_20, %c0_21], %37 {strides = array<i32>} : memref<1x4x256xf32, #tpu.memory_space<vmem>>, vector<1x4x256xf32>,
    %39 = vector.broadcast %32 : vector<1x4x1xf32> to vector<1x4x256xf32>
    %40 = arith.mulf %15, %39 : vector<1x4x256xf32>
    %41 = vector.broadcast %33 : vector<1x4x1xf32> to vector<1x4x256xf32>
    %42 = arith.addf %40, %41 : vector<1x4x256xf32>
    %c0_22 = arith.constant 0 : index
    %c0_23 = arith.constant 0 : index
    %c0_24 = arith.constant 0 : index
    %43 = vector.load %arg7[%c0_22, %c0_23, %c0_24] : memref<1x4x256xf32, #tpu.memory_space<vmem>>, vector<1x4x256xf32>
    tpu.vector_store %arg7[%c0_22, %c0_23, %c0_24], %42 {strides = array<i32>} : memref<1x4x256xf32, #tpu.memory_space<vmem>>, vector<1x4x256xf32>,
    return
  }
  func.func @transform_0(%arg0: i32, %arg1: i32) -> (i32, i32, i32) {
    %c0_i32 = arith.constant 0 : i32
    %c0_i32_0 = arith.constant 0 : i32
    return %arg1, %arg0, %c0_i32 : i32, i32, i32
  }
  func.func @transform_1(%arg0: i32, %arg1: i32) -> (i32, i32, i32) {
    %c0_i32 = arith.constant 0 : i32
    %c0_i32_0 = arith.constant 0 : i32
    return %arg1, %arg0, %c0_i32 : i32, i32, i32
  }
  func.func @transform_2(%arg0: i32, %arg1: i32) -> (i32, i32, i32) {
    %c0_i32 = arith.constant 0 : i32
    %c0_i32_0 = arith.constant 0 : i32
    %c0_i32_1 = arith.constant 0 : i32
    return %c0_i32, %arg0, %c0_i32_0 : i32, i32, i32
  }
  func.func @transform_3(%arg0: i32, %arg1: i32) -> (i32, i32, i32) {
    %c0_i32 = arith.constant 0 : i32
    %c0_i32_0 = arith.constant 0 : i32
    %c0_i32_1 = arith.constant 0 : i32
    return %c0_i32, %arg0, %c0_i32_0 : i32, i32, i32
  }
  func.func @transform_4(%arg0: i32, %arg1: i32) -> (i32, i32, i32) {
    %c0_i32 = arith.constant 0 : i32
    %c0_i32_0 = arith.constant 0 : i32
    return %arg1, %arg0, %c0_i32 : i32, i32, i32
  }
  func.func @transform_5(%arg0: i32, %arg1: i32) -> (i32, i32, i32) {
    %c0_i32 = arith.constant 0 : i32
    %c0_i32_0 = arith.constant 0 : i32
    return %arg1, %arg0, %c0_i32 : i32, i32, i32
  }
}

</mosaic_0001>

<bundles_post_ra>
// kernel: tpu_custom_call.1
= control target key start
LH: loop header
LB: loop body
LE: loop exit
PB: predicated region body
PF: predicated region fallthrough
CT: control target
= control target key end

     0   :  { %s1210_s0 = inlined_call_operand.hbm [shape: f32[2,4,256], index: 0, kind: input, shape index: {}]   ;;  %s1211_s1 = inlined_call_operand.hbm [shape: f32[2,4,256], index: 1, kind: input, shape index: {}]   ;;  %s1212_s2 = inlined_call_operand.vmem [shape: f32[1,4,1], index: 2, kind: input, shape index: {}]   ;;  %s1213_s3 = inlined_call_operand.vmem [shape: f32[1,4,1], index: 3, kind: input, shape index: {}]   ;;  %s1214_s4 = inlined_call_operand.hbm [shape: f32[2,4,256], index: 4, kind: output, shape index: {0}]   ;;  %s1215_s5 = inlined_call_operand.hbm [shape: f32[2,4,256], index: 5, kind: output, shape index: {1}]  }
   0x1   :  { %1216 = sst [smem:[#allocation14_spill]] %s1210_s0 }
   0x2   :  { %11 = vsyncpa [#allocation3], 0 }
   0x3   :  { %13 = vsyncpa [#allocation3 + $0x1], 0 }
   0x4   :  { %14 = vsyncpa [#allocation6], 0 }
   0x5   :  { %16 = vsyncpa [#allocation6 + $0x1], 0 }
   0x6   :  { %17 = vsyncpa [#allocation4], 0 }
   0x7   :  { %19 = vsyncpa [#allocation4 + $0x1], 0 }
   0x8   :  { %20 = vsyncpa [#allocation9], 0 }
   0x9   :  { %22 = vsyncpa [#allocation9 + $0x1], 0  ;;  %s987_s18 = smov 0   ;;  %s989_s19 = smov 0  }
   0xa   :  { %s991_s20 = smov 0   ;;  %s993_s21 = smov 0  }
   0xb   :  { %s995_s22 = smov 0   ;;  %s997_s23 = smov 0  }
   0xc LB: > { %s664_s24 = sadd.s32 4294967295, %s949_s23   ;;  %s665_s25 = sadd.s32 4294967294, %s949_s23   ;;  %s949_s23 = sphi %s997_s23, %s28_s23   ;;  %s945_s22 = sphi %s995_s22, %s1229_s22   ;;  %s941_s21 = sphi %s993_s21, %s1228_s21   ;;  %s937_s20 = sphi %s991_s20, %s1227_s20   ;;  %s933_s19 = sphi %s989_s19, %s1226_s19   ;;  %s929_s18 = sphi %s987_s18, %s1225_s18  }
   0xd   : > { %s37_s26 = sadd.s32 1, %s945_s22  ;;  %s49_s27 = sadd.s32 1, %s937_s20 }
   0xe   : > { %p38_p0 = scmp.ge.s32.totalorder %s37_s26, 2  ;;  %p56_p1 = scmp.ne.s32.totalorder %s937_s20, %s933_s19 }
   0xf   : > { %p57_p2 = scmp.eq.s32.totalorder %s949_s23, 0  ;;  %p62_p3 = scmp.ne.s32.totalorder %s933_s19, %s929_s18 }
  0x10   : > { %s1231_s26 = smov (%p38_p0, %s37_s26), 0  ;;  %p63_p5 = scmp.eq.s32.totalorder %s664_s24, 0 }
  0x11   : > { %p1028_p4 = por %p57_p2, %p56_p1  ;;  %s44_s29 = ssub.s32 %s945_s22, %s1231_s26 }
  0x12   : > { %p168_p6 = scmp.eq.s32.totalorder %s664_s24, 1  ;;  %p47_p7 = scmp.eq.s32.totalorder %s44_s29, 0 }
  0x13   : > { %p1034_p8 = por %p63_p5, %p62_p3  ;;  %p174_p10 = scmp.eq.s32.totalorder %s665_s25, 1 }
  0x14   : > { %p1038_p9 = por %p168_p6, %p56_p1  ;;  %p721_p13 = scmp.lt.s32.totalorder %s949_s23, 2 }
  0x15   : > { %s1043_s7 = scalar_select %p47_p7, %s937_s20, %s49_s27  }
  0x16   : > { %p1045_p11 = por %p174_p10, %p62_p3  ;;  %s1052_s9 = sand.u32 1, %s937_s20  }
  0x17   : > { %s670_s10 = sshll.u32 %s1052_s9, 3  ;;  %s689_s11 = sshll.u32 %s945_s22, 7 }
  0x18   : > { %s1221_s0 = sld [smem:[#allocation14_spill]]  ;;  %s240_s15 = scalar_lea.vmem [#allocation2], %s670_s10 }
  0x19   : > { %s250_s16 = sshll.u32 %s240_s15, 4  ;;  %p1061_p0 = pnand %p721_p13, %p1028_p4  ;;  %s251_s16 = int_to_ptr.vmem [resolvable:$true] %s250_s16 }
  0x1a   : > { %p676_p1 = scmp.ge.s32.totalorder %s949_s23, 1  ;;  %p276_p2 = scmp.lt.s32.totalorder %s949_s23, 3 }
  0x1b   : > { %s237_s24 = scalar_lea.sflag [#allocation3], %s1052_s9  ;;  %p781_p3 = pneg %p1061_p0 }
  0x1c   : > { %s792_s25 = scalar_lea.vmem %s251_s16, 128  ;;  %s951_s27 = smov [#allocation2]  }
  0x1d   : > { %p793_p5 = scmp.ne.s32.totalorder %s251_s16, %s792_s25  ;;  %s797_s29 = sshll.u32 %s951_s27, 4  ;;  %s798_s29 = int_to_ptr.vmem [resolvable:$false] %s797_s29 }
  0x1e   : > { %s248_s14 = scalar_lea.hbm %s1221_s0, %s689_s11  ;;  %s799_s28 = scalar_lea.vmem %s798_s29, 256 }
  0x1f   : > { %p795_p6 = pnand %p793_p5, %p781_p3  ;;  %p800_p4 = scmp.lt.s32.totalorder %s251_s16, %s798_s29 }
  0x20   : > { %p801_p10 = scmp.lt.s32.totalorder %s799_s28, %s792_s25 }
  0x21   : > { %p796_p7 = pneg %p795_p6 }
  0x22   : > { %p802_p13 = por %p801_p10, %p800_p4 }
  0x24   : > { %p803_p12 = pnand %p802_p13, %p796_p7 }
  0x26   : > { %806 = shalt.err (!%p803_p12)
}
  0x27   : > { %710 = dma.hbm_to_vmem [thread:$0]  (!%p1061_p0), %s248_s14, 128, %s251_s16, %s237_s24  }
  0x28   : > { %p1079_p5 = pnand %p676_p1, %p276_p2  ;;  %s269_s25 = scalar_lea.hbm %s1211_s1, %s689_s11 }
  0x29   : > { %s261_s27 = scalar_lea.vmem [#allocation5], %s670_s10  ;;  %s258_s28 = scalar_lea.sflag [#allocation6], %s1052_s9 }
  0x2a   : > { %s271_s29 = sshll.u32 %s261_s27, 4  ;;  %s952_s14 = smov [#allocation5]   ;;  %s272_s29 = int_to_ptr.vmem [resolvable:$true] %s271_s29 }
  0x2b   : > { %s820_s0 = scalar_lea.vmem %s272_s29, 128  ;;  %s825_s16 = sshll.u32 %s952_s14, 4  ;;  %s826_s16 = int_to_ptr.vmem [resolvable:$false] %s825_s16 }
  0x2c   : > { %p821_p12 = scmp.ne.s32.totalorder %s272_s29, %s820_s0  ;;  %s827_s24 = scalar_lea.vmem %s826_s16, 256 }
  0x2d   : > { %p828_p1 = scmp.lt.s32.totalorder %s272_s29, %s826_s16  ;;  %p829_p2 = scmp.lt.s32.totalorder %s827_s24, %s820_s0 }
  0x2e   : > { %p823_p6 = pnand %p821_p12, %p781_p3 }
  0x2f   : > { %p830_p4 = por %p829_p2, %p828_p1 }
  0x30   : > { %p824_p7 = pneg %p823_p6 }
  0x32   : > { %p831_p10 = pnand %p830_p4, %p824_p7 }
  0x34   : > { %834 = shalt.err (!%p831_p10)
}
  0x35   : > { %713 = dma.hbm_to_vmem [thread:$0]  (!%p1061_p0), %s269_s25, 128, %s272_s29, %s258_s28  }
  0x36   : > { %280 = sbr.rel (%p1079_p5) target bundleno = 1003 (0x3eb), region = 36  ;;  %s1095_s9 = sand.u32 (!%p1079_p5), 1, %s933_s19  }
  0x37   : > { %s1098_s10 = sshll.u32 (!%p1079_p5), %s1095_s9, 3  ;;  %s283_s11 = scalar_lea.sflag (!%p1079_p5), [#allocation3], %s1095_s9 }
  0x38   : > { %s286_s0 = scalar_lea.vmem (!%p1079_p5), [#allocation2], %s1098_s10 }
  0x3b   : > { %912 = dma.done.wait (%p1034_p8), %s283_s11, 128  }
  0x3c   : > { %914 = vsyncadd (%p1034_p8), %s283_s11, 4294967168  ;;  %s292_s17 = scalar_lea.sflag [#allocation6], %s1095_s9  ;;  %s295_s12 = scalar_lea.vmem [#allocation5], %s1098_s10 }
  0x3d   : > { %916 = dma.done.wait (%p1034_p8), %s292_s17, 128  }
  0x3e   : > { %918 = vsyncadd (%p1034_p8), %s292_s17, 4294967168  ;;  %vm353_vm0 = vcmask 1043456   ;;  %v348_v0 = vld [vmem:[%s286_s0] sm:$0xff]  ;;  %v349_v1 = vld [vmem:[%s295_s12] sm:$0xff]  ;;  %vm368_vm1 = vcmask 3072   ;;  %v953_v42 = vmov 0   ;;  %v428_v54 = vlaneseq }
  0x3f   : > { %v351_v2 = vcombine.high %v348_v0, %v348_v0  ;;  %v354_v3 = vsel %vm353_vm0, %v348_v0, 0.0  ;;  %v360_v4 = vcombine.high %v349_v1, %v349_v1  ;;  %v362_v6 = vsel %vm353_vm0, %v349_v1, 0.0  ;;  %773 = vset.pattern.permute.xlu0 %v953_v42  ;;  %774 = vset.pattern.permute.xlu1 %v953_v42  ;;  %v420_v44 = vld [vmem:[%s1213_s3] sm:$0xf]  ;;  %s691_s11 = sshll.u32 %s941_s21, 7  ;;  %s332_s0 = scalar_lea.vmem [#allocation7], %s1098_s10 }
  0x40   : > { %v417_v49 = vld [vmem:[%s1212_s2] sm:$0xf]  ;;  %v954_v52 = vmov 839922192   ;;  %v429_v56 = vshrl.u32 %v428_v54, 7  ;;  %s473_s17 = sshll.u32 %s332_s0, 4  ;;  %s1134_s25 = scalar_lea.hbm %s1214_s4, %s691_s11  ;;  %s1136_s17 = int_to_ptr.vmem [resolvable:$true] %s473_s17 }
  0x41   : > { %v355_v5 = vsel %vm353_vm0, %v351_v2, 0.0  ;;  %v363_v7 = vsel %vm353_vm0, %v360_v4, 0.0  ;;  %v426_v53 = vunpack.c.l.s4 %v954_v52  ;;  %s339_s12 = scalar_lea.vmem [#allocation8], %s1098_s10  ;;  %s1141_s21 = scalar_lea.hbm %s1215_s5, %s691_s11 }
  0x42   : > { %v356_v8 = vadd.f32 %v355_v5, %v354_v3  ;;  %v364_v9 = vadd.f32 %v363_v7, %v362_v6  ;;  %s452_s10 = scalar_lea.sflag [#allocation4], %s1095_s9  ;;  %s955_s14 = smov [#allocation7]  }
  0x43   : > { %v427_v55 = vunpack.c.0.s8 %v426_v53  ;;  %s839_s16 = sshll.u32 %s955_s14, 4  ;;  %s840_s16 = int_to_ptr.vmem [resolvable:$false] %s839_s16 }
  0x44   : > { %357 = vadd.xlane.f32.xlu0 %v356_v8  ;;  %p842_p13 = scmp.lt.s32.totalorder %s1136_s17, %s840_s16 }
  0x45   : > { %v430_v57 = vsub.s32 %v427_v55, %v429_v56 }
  0x48   : > { %365 = vadd.xlane.f32.xlu0 %v364_v9 }
  0xcd   : > { %v358_v10 = vpop.xlane.xlu0 %357 }
  0xd1   : > { %v366_v11 = vpop.xlane.xlu0 %365 }
  0xd2   : > { %v367_v12 = vadd.f32 %v366_v11, %v358_v10 }
  0xd4   : > { %v369_v13 = vsel %vm368_vm1, %v367_v12, 0.0 }
  0xd5   : > { %370 = vadd.xlane.f32.xlu1 %v369_v13 }
 0x15e   : > { %v371_v14 = vpop.xlane.xlu1 %370 }
 0x15f   : > { %v372_v15 = vrot.slane %v371_v14, 4 }
 0x161   : > { %v373_v16 = vadd.f32 %v372_v15, %v371_v14 }
 0x163   : > { %v374_v17 = vrot.slane %v373_v16, 2 }
 0x165   : > { %v375_v18 = vadd.f32 %v374_v17, %v373_v16 }
 0x167   : > { %v376_v19 = vrot.slane %v375_v18, 1 }
 0x169   : > { %v377_v20 = vadd.f32 %v376_v19, %v375_v18 }
 0x16b   : > { %693 = vpush %v377_v20 }
 0x19c   : > { %s694_s30 = spop %693 }
 0x19d   : > { %s379_s13 = smul.f32 0.00048828125, %s694_s30  ;;  %s489_s30 = sshll.u32 %s339_s12, 4  ;;  %s1143_s30 = int_to_ptr.vmem [resolvable:$true] %s489_s30 }
 0x19f   : > { %v380_v21 = vstv %s379_s13 }
 0x1a0   : > { %v381_v22 = vsub.f32 %v348_v0, %v380_v21  ;;  %v382_v23 = vsub.f32 %v349_v1, %v380_v21 }
 0x1a2   : > { %v383_v24 = vmul.f32 %v381_v22, %v381_v22  ;;  %v384_v25 = vmul.f32 %v382_v23, %v382_v23 }
 0x1a4   : > { %v394_v26 = vcombine.high %v384_v25, %v384_v25  ;;  %v386_v27 = vcombine.high %v383_v24, %v383_v24  ;;  %v396_v28 = vsel %vm353_vm0, %v384_v25, 0.0  ;;  %v388_v30 = vsel %vm353_vm0, %v383_v24, 0.0 }
 0x1a6   : > { %v397_v29 = vsel %vm353_vm0, %v394_v26, 0.0  ;;  %v389_v31 = vsel %vm353_vm0, %v386_v27, 0.0 }
 0x1a7   : > { %v398_v32 = vadd.f32 %v397_v29, %v396_v28  ;;  %v390_v33 = vadd.f32 %v389_v31, %v388_v30 }
 0x1a9   : > { %399 = vadd.xlane.f32.xlu0 %v398_v32  ;;  %391 = vadd.xlane.f32.xlu1 %v390_v33 }
 0x232   : > { %v400_v34 = vpop.xlane.xlu0 %399  ;;  %v392_v35 = vpop.xlane.xlu1 %391 }
 0x233   : > { %v401_v36 = vadd.f32 %v400_v34, %v392_v35 }
 0x235   : > { %v402_v37 = vsel %vm368_vm1, %v401_v36, 0.0 }
 0x236   : > { %403 = vadd.xlane.f32.xlu1 %v402_v37 }
 0x247   : > { %436 = vperm.xlu1 %774, %v420_v44  }
 0x2bf   : > { %v404_v38 = vpop.xlane.xlu1 %403 }
 0x2c0   : > { %v405_v39 = vrot.slane %v404_v38, 4 }
 0x2c2   : > { %v406_v40 = vadd.f32 %v405_v39, %v404_v38 }
 0x2c3   : > { %v437_v58 = vpop.permute.xlu1 %436 }
 0x2c4   : > { %v407_v41 = vrot.slane %v406_v40, 2  ;;  %v444_v61 = vrot.slane %v437_v58, %v430_v57 }
 0x2c6   : > { %v408_v43 = vadd.f32 %v407_v41, %v406_v40 }
 0x2c8   : > { %v409_v45 = vrot.slane %v408_v43, 1 }
 0x2ca   : > { %v410_v46 = vadd.f32 %v409_v45, %v408_v43 }
 0x2cc   : > { %695 = vpush %v410_v46 }
 0x2fd   : > { %s696_s27 = spop %695 }
 0x2fe   : > { %s412_s29 = smul.f32 0.00048828125, %s696_s27 }
 0x300   : > { %s413_s28 = sadd.f32 1e-05, %s412_s29 }
 0x302   : > { %v414_v47 = vstv %s413_s28  ;;  %s835_s28 = scalar_lea.vmem %s1136_s17, 128 }
 0x303   : > { %777 = vrsqrt.f32 %v414_v47  ;;  %p836_p8 = scmp.ne.s32.totalorder %s1136_s17, %s835_s28 }
 0x305   : > { %p837_p0 = pnand %p836_p8, %p1038_p9 }
 0x307   : > { %p838_p3 = pneg %p837_p0 }
 0x310   : > { %v778_v48 = vpop.eup %777 }
 0x311   : > { %697 = vpush %v778_v48 }
 0x342   : > { %s698_s24 = spop %697 }
 0x343   : > { %v418_v50 = vstv %s698_s24  ;;  %s841_s24 = scalar_lea.vmem %s840_s16, 256 }
 0x344   : > { %v419_v51 = vmul.f32 %v418_v50, %v417_v49  ;;  %p843_p5 = scmp.lt.s32.totalorder %s841_s24, %s835_s28 }
 0x346   : > { %423 = vperm.xlu0 %773, %v419_v51   ;;  %p844_p12 = por %p843_p5, %p842_p13 }
 0x348   : > { %p845_p6 = pnand %p844_p12, %p838_p3 }
 0x3c1   : > { %v424_v59 = vpop.permute.xlu0 %423 }
 0x3c2   : > { %v431_v60 = vrot.slane %v424_v59, %v430_v57 }
 0x3c4   : > { %v433_v62 = vmul.f32 %v431_v60, %v381_v22  ;;  %v448_v63 = vmul.f32 %v431_v60, %v382_v23 }
 0x3c6   : > { %v446_v0 = vadd.f32 %v444_v61, %v433_v62  ;;  %v449_v1 = vadd.f32 %v448_v63, %v444_v61 }
 0x3c8   : > { %447 = vst [vmem:[%s332_s0] sm:$0xff] %v446_v0  ;;  %450 = vst [vmem:[%s339_s12] sm:$0xff] %v449_v1 }
 0x3c9   : > { %848 = shalt.err (!%p845_p6)
}
 0x3ca   : > { %s849_s11 = scalar_lea.hbm %s1134_s25, 128  ;;  %s853_s13 = scalar_lea.hbm %s1214_s4, 256 }
 0x3cb   : > { %p850_p7 = scmp.ne.s32.totalorder %s1134_s25, %s849_s11  ;;  %p854_p4 = scmp.lt.s32.totalorder %s1134_s25, %s1214_s4 }
 0x3cc   : > { %p855_p10 = scmp.lt.s32.totalorder %s853_s13, %s849_s11 }
 0x3cd   : > { %p851_p1 = pnand %p850_p7, %p1038_p9 }
 0x3ce   : > { %p856_p8 = por %p855_p10, %p854_p4 }
 0x3cf   : > { %p852_p2 = pneg %p851_p1 }
 0x3d1   : > { %p857_p0 = pnand %p856_p8, %p852_p2 }
 0x3d3   : > { %860 = shalt.err (!%p857_p0)
}
 0x3d4   : > { %703 = dma.vmem_to_hbm [thread:$0]  (%p1038_p9), %s1136_s17, 128, %s1134_s25, %s452_s10  }
 0x3d5   : > { %s457_s29 = scalar_lea.sflag [#allocation9], %s1095_s9  ;;  %s861_s28 = scalar_lea.vmem %s1143_s30, 128 }
 0x3d6   : > { %p862_p3 = scmp.ne.s32.totalorder %s1143_s30, %s861_s28  ;;  %s956_s14 = smov [#allocation8]  }
 0x3d7   : > { %s865_s16 = sshll.u32 %s956_s14, 4  ;;  %s866_s16 = int_to_ptr.vmem [resolvable:$false] %s865_s16 }
 0x3d8   : > { %p863_p13 = pnand %p862_p3, %p1038_p9  ;;  %s867_s24 = scalar_lea.vmem %s866_s16, 256 }
 0x3d9   : > { %p868_p12 = scmp.lt.s32.totalorder %s1143_s30, %s866_s16  ;;  %p869_p6 = scmp.lt.s32.totalorder %s867_s24, %s861_s28 }
 0x3da   : > { %p864_p5 = pneg %p863_p13 }
 0x3db   : > { %p870_p7 = por %p869_p6, %p868_p12 }
 0x3dd   : > { %p871_p1 = pnand %p870_p7, %p864_p5 }
 0x3df   : > { %874 = shalt.err (!%p871_p1)
}
 0x3e0   : > { %s875_s17 = scalar_lea.hbm %s1141_s21, 128  ;;  %s879_s10 = scalar_lea.hbm %s1215_s5, 256 }
 0x3e1   : > { %p876_p2 = scmp.ne.s32.totalorder %s1141_s21, %s875_s17  ;;  %p880_p8 = scmp.lt.s32.totalorder %s1141_s21, %s1215_s5 }
 0x3e2   : > { %p881_p0 = scmp.lt.s32.totalorder %s879_s10, %s875_s17 }
 0x3e3   : > { %p877_p4 = pnand %p876_p2, %p1038_p9 }
 0x3e4   : > { %p882_p3 = por %p881_p0, %p880_p8 }
 0x3e5   : > { %p878_p10 = pneg %p877_p4 }
 0x3e7   : > { %p883_p13 = pnand %p882_p3, %p878_p10 }
 0x3e9   : > { %886 = shalt.err (!%p883_p13)
}
 0x3ea   : > { %704 = dma.vmem_to_hbm [thread:$0]  (%p1038_p9), %s1143_s30, 128, %s1141_s21, %s457_s29  }
 0x3eb PF: > { %s501_s12 = sand.u32 1, %s929_s18   ;;  %p1224_p5 = scmp.ge.s32.totalorder %s949_s23, 2 }
 0x3ec   : > { %s502_s13 = scalar_lea.sflag [#allocation4], %s501_s12 }
 0x3ed   : > { %p715_p12 = pnand %p1224_p5, %p1045_p11 }
 0x3ef   : > { %p716_p6 = pneg %p715_p12 }
 0x3f1   : > { %920 = dma.done.wait (%p716_p6), %s502_s13, 128  }
 0x3f2   : > { %922 = vsyncadd (%p716_p6), %s502_s13, 4294967168  ;;  %s511_s15 = scalar_lea.sflag [#allocation9], %s501_s12 }
 0x3f3   : > { %924 = dma.done.wait (%p716_p6), %s511_s15, 128  }
 0x3f4   : > { %926 = vsyncadd (%p716_p6), %s511_s15, 4294967168  ;;  %s28_s23 = sadd.s32 1, %s949_s23   ;;  %s1225_s18 = smov %s933_s19 }
 0x3f5   : > { %p25_p7 = scmp.ge.s32.totalorder %s28_s23, 4   ;;  %s1226_s19 = smov %s937_s20 }
 0x3f6   : > { %s1227_s20 = smov %s1043_s7  ;;  %s1228_s21 = smov %s945_s22 }
 0x3f7   : > { %s1229_s22 = smov %s1231_s26  ;;  %27 = sbr.rel (!%p25_p7) target bundleno = 12 (0xc), region = 117 }
 0x3fc   :  { %516 = vsyncpa [#allocation3], 1 }
 0x3fd   :  { %518 = vsyncpa [#allocation3 + $0x1], 1 }
 0x3fe   :  { %519 = vsyncpa [#allocation6], 1 }
 0x3ff   :  { %521 = vsyncpa [#allocation6 + $0x1], 1 }
 0x400   :  { %522 = vsyncpa [#allocation4], 1 }
 0x401   :  { %524 = vsyncpa [#allocation4 + $0x1], 1 }
 0x402   :  { %525 = vsyncpa [#allocation9], 1 }
 0x403   :  { %527 = vsyncpa [#allocation9 + $0x1], 1 }

</bundles_post_ra>
